<compile_context>
chip_gen: v7x
topology: tpu7x:2x2x1
jax: 0.10.0
libtpu: 0.0.40
codegen_flags: <defaults>
</compile_context>

<pallas_src>
import functools
import math

import jax
import jax.numpy as jnp
from jax import lax
from jax.experimental import pallas as pl
from jax.experimental.pallas import tpu as pltpu


def _round_up(x: int, m: int) -> int:
    return ((x + m - 1) // m) * m


def _vmem_capacity_bytes(default: int = 64 * 1024 * 1024) -> int:
    """Chip VMEM capacity; conservative (v7x-sized) fallback if the query fails."""
    try:
        info = pltpu.get_tpu_info()
        cap = getattr(info, "vmem_capacity_bytes", None)
        if cap:
            return int(cap)
    except Exception:
        pass
    return default


def _ffn_kernel(x_ref, w1_ref, b1_ref, w2_ref, b2_ref, o_ref, acc_ref, *,
                approximate_gelu: bool):
    # x_ref:  (tm, D)   row tile of the flattened input
    # w1_ref: (D, tf)   column tile of W1;   b1_ref: (1, tf)
    # w2_ref: (tf, D)   row tile of W2;      b2_ref: (1, D)
    # o_ref:  (tm, D)   output tile (resident across the F axis)
    # acc_ref:(tm, D)   f32 VMEM accumulator
    f = pl.program_id(1)

    @pl.when(f == 0)
    def _():
        # Seed the accumulator with the output bias -> no finalize-time add.
        acc_ref[...] = jnp.broadcast_to(b2_ref[...].astype(jnp.float32),
                                        acc_ref.shape)

    x = x_ref[...]

    # Linear 1 on this hidden-dim tile (MXU, f32 accumulation) + bias.
    h = jnp.dot(x, w1_ref[...], preferred_element_type=jnp.float32)
    h = h + b1_ref[...].astype(jnp.float32)

    if approximate_gelu:
        # tanh approximation -> transcendental goes to the (otherwise idle) EUP slot.
        c = 0.7978845608028654  # sqrt(2/pi)
        h = 0.5 * h * (1.0 + jnp.tanh(c * (h + 0.044715 * h * h * h)))
    else:
        # Exact (erf-based) GELU in f32 — matches torch.nn.GELU() default.
        h = 0.5 * h * (1.0 + lax.erf(h * (1.0 / math.sqrt(2.0))))

    # Dropout -> identity (inference semantics).

    # Partial Linear 2 contribution of this hidden tile.
    acc_ref[...] += jnp.dot(h.astype(x.dtype), w2_ref[...],
                            preferred_element_type=jnp.float32)

    @pl.when(f == pl.num_programs(1) - 1)
    def _():
        o_ref[...] = acc_ref[...].astype(o_ref.dtype)


def feed_forward(x, w1, b1, w2, b2, *, tm=512, tf=1024, weights_resident=None,
                 compute_dtype=None, approximate_gelu=False,
                 vmem_limit_bytes=None):
    """x: (batch, seq, dim_model) -> (batch, seq, dim_model)

    w1: (dim_model, dim_ffn), b1: (dim_ffn,)
    w2: (dim_ffn, dim_model), b2: (dim_model,)

    weights_resident: None = auto (size-gated on chip VMEM), True/False = force.
    compute_dtype:    e.g. jnp.bfloat16 to get the bf16-MXU rate on v6e/v7x
                      (f32 accumulation is kept either way).
    """
    B, S, D = x.shape
    F = w1.shape[1]
    M = B * S

    if compute_dtype is not None:
        x = x.astype(compute_dtype)
        w1 = w1.astype(compute_dtype)
        b1 = b1.astype(compute_dtype)
        w2 = w2.astype(compute_dtype)
        b2 = b2.astype(compute_dtype)

    x2d = x.reshape(M, D)
    xsize = jnp.dtype(x.dtype).itemsize
    wsize = jnp.dtype(w1.dtype).itemsize

    # Minimum packed sublane multiple for the row axis (f32:8, bf16:16, int8/fp8:32).
    rmul = {4: 8, 2: 16, 1: 32}.get(xsize, 8)

    # --- row tile selection -------------------------------------------------
    tm = _round_up(max(tm, rmul), rmul)
    tm = min(tm, _round_up(M, rmul))
    # Keep >= 2 row tiles when possible so the "parallel" M axis can be sharded
    # across both v7x TensorCores (megacore).
    while (_round_up(M, tm) // tm) < 2 and tm > max(128, rmul):
        tm //= 2
    Mp = _round_up(M, tm)

    # --- hidden-dim tile selection (weights-resident vs. F-tiled) ------------
    F128 = _round_up(F, 128)

    cap = _vmem_capacity_bytes()
    if vmem_limit_bytes is None:
        # 96 MiB on 128-MiB parts (v5e/v6e), 48 MiB on v7x's 64-MiB VMEM.
        vmem_limit_bytes = (3 * cap) // 4
    budget = vmem_limit_bytes - 6 * 1024 * 1024  # headroom for internal scratch

    # Conservative VMEM estimate for the weights-resident (tf == Fp) variant:
    # double-buffered W1/W2 + biases + double-buffered x/out tiles + f32 acc + f32 h.
    resident_est = (4 * D * F128 * wsize            # W1 + W2, x2 buffers each
                    + 2 * (F128 + D) * wsize        # b1 + b2, x2 buffers
                    + 4 * tm * D * xsize            # x + out tiles, x2 buffers
                    + tm * D * 4                    # acc (f32)
                    + tm * F128 * 6)                # h (f32) + cast copy headroom

    if weights_resident is None:
        weights_resident = resident_est <= budget

    if weights_resident:
        tf = F128
    else:
        tf = min(_round_up(max(tf, 128), 128), F128)
    Fp = _round_up(F, tf)

    # --- padding --------------------------------------------------------------
    if Mp != M:
        x2d = jnp.pad(x2d, ((0, Mp - M), (0, 0)))
    # Padded hidden columns are zero -> GELU(0 + 0) = 0 -> zero contribution.
    if Fp != F:
        w1 = jnp.pad(w1, ((0, 0), (0, Fp - F)))
        b1 = jnp.pad(b1, ((0, Fp - F),))
        w2 = jnp.pad(w2, ((0, Fp - F), (0, 0)))

    b1_2d = b1.reshape(1, Fp)
    b2_2d = b2.reshape(1, D)

    # --- cost estimate (includes weight re-streaming on the tiled path) --------
    n_row_tiles = Mp // tm
    weight_passes = 1 if weights_resident else n_row_tiles
    cost = pl.CostEstimate(
        flops=4 * Mp * D * Fp,                       # two matmuls
        transcendentals=Mp * Fp,                     # GELU erf/tanh
        bytes_accessed=(2 * Mp * D * xsize                     # x read + out write
                        + weight_passes * (2 * D * Fp + Fp) * wsize  # W1 + W2 + b1
                        + D * wsize),                          # b2
    )

    kernel = functools.partial(_ffn_kernel, approximate_gelu=approximate_gelu)

    out = pl.pallas_call(
        kernel,
        out_shape=jax.ShapeDtypeStruct((Mp, D), x.dtype),
        grid_spec=pltpu.PrefetchScalarGridSpec(
            num_scalar_prefetch=0,
            grid=(Mp // tm, Fp // tf),
            in_specs=[
                pl.BlockSpec((tm, D), lambda i, f: (i, 0)),   # x row tile
                pl.BlockSpec((D, tf), lambda i, f: (0, f)),   # W1 column tile
                pl.BlockSpec((1, tf), lambda i, f: (0, f)),   # b1 tile
                pl.BlockSpec((tf, D), lambda i, f: (f, 0)),   # W2 row tile
                pl.BlockSpec((1, D), lambda i, f: (0, 0)),    # b2 (constant)
            ],
            out_specs=pl.BlockSpec((tm, D), lambda i, f: (i, 0)),
            scratch_shapes=[pltpu.VMEM((tm, D), jnp.float32)],
        ),
        compiler_params=pltpu.CompilerParams(
            dimension_semantics=("parallel", "arbitrary"),
            vmem_limit_bytes=vmem_limit_bytes,
        ),
        cost_estimate=cost,
    )(x2d, w1, b1_2d, w2, b2_2d)

    if Mp != M:
        out = out[:M]
    return out.reshape(B, S, D)


def init_params(key, dim_model, dim_ffn, dtype=jnp.float32):
    """Deterministic PyTorch-Linear-style init: U(-1/sqrt(fan_in), 1/sqrt(fan_in))."""
    k1, k2, k3, k4 = jax.random.split(key, 4)
    bound1 = 1.0 / math.sqrt(dim_model)
    bound2 = 1.0 / math.sqrt(dim_ffn)
    w1 = jax.random.uniform(k1, (dim_model, dim_ffn), dtype, -bound1, bound1)
    b1 = jax.random.uniform(k2, (dim_ffn,), dtype, -bound1, bound1)
    w2 = jax.random.uniform(k3, (dim_ffn, dim_model), dtype, -bound2, bound2)
    b2 = jax.random.uniform(k4, (dim_model,), dtype, -bound2, bound2)
    return w1, b1, w2, b2


if __name__ == "__main__":
    # Small shapes consistent with the module's forward: (batch, seq, dim_model).
    batch, seq, dim_model, dim_ffn = 2, 8, 128, 512

    key = jax.random.PRNGKey(0)
    kx, kp = jax.random.split(key)
    x = jax.random.normal(kx, (batch, seq, dim_model), jnp.float32)
    w1, b1, w2, b2 = init_params(kp, dim_model, dim_ffn)

    # Reference in plain JAX (exact GELU, dropout identity / eval mode).
    h_ref = x.reshape(-1, dim_model) @ w1 + b1
    h_ref = 0.5 * h_ref * (1.0 + lax.erf(h_ref / math.sqrt(2.0)))
    y_ref = (h_ref @ w2 + b2).reshape(batch, seq, dim_model)

    # 1) Auto path: for these tiny weights the weights-resident (single F step)
    #    variant is chosen on any supported chip.
    y = feed_forward(x, w1, b1, w2, b2)
    jax.block_until_ready(y)
    assert jnp.allclose(y, y_ref, atol=1e-4, rtol=1e-4), "mismatch (resident path)"

    # 2) Forced F-tiled path (tf < dim_ffn) to exercise the f-axis accumulator.
    y2 = feed_forward(x, w1, b1, w2, b2, weights_resident=False, tf=256)
    jax.block_until_ready(y2)
    assert jnp.allclose(y2, y_ref, atol=1e-4, rtol=1e-4), "mismatch (tiled path)"

    print("KERNEL_OK")
</pallas_src>

<mosaic_0001>
module attributes {stable_mosaic.version = 11 : i64} {
  func.func @_ffn_kernel(%arg0: i32, %arg1: i32, %arg2: memref<16x128xf32, #tpu.memory_space<vmem>>, %arg3: memref<128x512xf32, #tpu.memory_space<vmem>>, %arg4: memref<1x512xf32, #tpu.memory_space<vmem>>, %arg5: memref<512x128xf32, #tpu.memory_space<vmem>>, %arg6: memref<1x128xf32, #tpu.memory_space<vmem>>, %arg7: memref<16x128xf32, #tpu.memory_space<vmem>>, %arg8: memref<16x128xf32, #tpu.memory_space<vmem>>) attributes {dimension_semantics = [#tpu.dimension_semantics<parallel>, #tpu.dimension_semantics<arbitrary>], iteration_bounds = array<i64: 1, 1>, scalar_prefetch = 0 : i64, scratch_operands = 1 : i64, tpu.core_type = #tpu.core_type<tc>, window_params = [{transform_indices = @transform_0, window_bounds = array<i64: 16, 128>}, {transform_indices = @transform_1, window_bounds = array<i64: 128, 512>}, {transform_indices = @transform_2, window_bounds = array<i64: 1, 512>}, {transform_indices = @transform_3, window_bounds = array<i64: 512, 128>}, {pipeline_mode = #tpu.pipeline_mode<synchronous>, transform_indices = @transform_4, window_bounds = array<i64: 1, 128>}, {transform_indices = @transform_5, window_bounds = array<i64: 16, 128>}]} {
    %c0_i32 = arith.constant 0 : i32
    %0 = arith.cmpi eq, %arg1, %c0_i32 : i32
    %1 = arith.extui %0 : i1 to i32
    %c0_i32_0 = arith.constant 0 : i32
    %2 = arith.cmpi ne, %1, %c0_i32_0 : i32
    scf.if %2 {
      %c0_18 = arith.constant 0 : index
      %c0_19 = arith.constant 0 : index
      %25 = vector.load %arg6[%c0_18, %c0_19] : memref<1x128xf32, #tpu.memory_space<vmem>>, vector<1x128xf32>
      %26 = vector.shape_cast %25 : vector<1x128xf32> to vector<1x128xf32>
      %27 = vector.broadcast %26 : vector<1x128xf32> to vector<16x128xf32>
      %c0_20 = arith.constant 0 : index
      %c0_21 = arith.constant 0 : index
      %28 = vector.load %arg8[%c0_20, %c0_21] : memref<16x128xf32, #tpu.memory_space<vmem>>, vector<16x128xf32>
      tpu.vector_store %arg8[%c0_20, %c0_21], %27 {strides = array<i32>} : memref<16x128xf32, #tpu.memory_space<vmem>>, vector<16x128xf32>,
    } else {
    }
    %c0 = arith.constant 0 : index
    %c0_1 = arith.constant 0 : index
    %3 = vector.load %arg2[%c0, %c0_1] : memref<16x128xf32, #tpu.memory_space<vmem>>, vector<16x128xf32>
    %c0_2 = arith.constant 0 : index
    %c0_3 = arith.constant 0 : index
    %4 = vector.load %arg3[%c0_2, %c0_3] : memref<128x512xf32, #tpu.memory_space<vmem>>, vector<128x512xf32>
    %cst = arith.constant dense<0.000000e+00> : vector<16x512xf32>
    %5 = tpu.matmul %3, %4, %cst {dimension_numbers = #tpu.dot_dimension_numbers<[1], [0], [0], [1], [0, 0, 1, 1], [], []>} : vector<16x128xf32>, vector<128x512xf32>, vector<16x512xf32> -> vector<16x512xf32>
    %c0_4 = arith.constant 0 : index
    %c0_5 = arith.constant 0 : index
    %6 = vector.load %arg4[%c0_4, %c0_5] : memref<1x512xf32, #tpu.memory_space<vmem>>, vector<1x512xf32>
    %7 = vector.broadcast %6 : vector<1x512xf32> to vector<16x512xf32>
    %8 = arith.addf %5, %7 : vector<16x512xf32>
    %cst_6 = arith.constant 5.000000e-01 : f32
    %9 = vector.broadcast %cst_6 : f32 to vector<16x512xf32>
    %10 = arith.mulf %9, %8 : vector<16x512xf32>
    %cst_7 = arith.constant 0.707106769 : f32
    %11 = vector.broadcast %cst_7 : f32 to vector<16x512xf32>
    %12 = arith.mulf %8, %11 : vector<16x512xf32>
    %13 = math.erf %12 : vector<16x512xf32>
    %cst_8 = arith.constant 1.000000e+00 : f32
    %14 = vector.broadcast %cst_8 : f32 to vector<16x512xf32>
    %15 = arith.addf %14, %13 : vector<16x512xf32>
    %16 = arith.mulf %10, %15 : vector<16x512xf32>
    %c0_9 = arith.constant 0 : index
    %c0_10 = arith.constant 0 : index
    %17 = vector.load %arg8[%c0_9, %c0_10] : memref<16x128xf32, #tpu.memory_space<vmem>>, vector<16x128xf32>
    %c0_11 = arith.constant 0 : index
    %c0_12 = arith.constant 0 : index
    %18 = vector.load %arg5[%c0_11, %c0_12] : memref<512x128xf32, #tpu.memory_space<vmem>>, vector<512x128xf32>
    %cst_13 = arith.constant dense<0.000000e+00> : vector<16x128xf32>
    %19 = tpu.matmul %16, %18, %cst_13 {dimension_numbers = #tpu.dot_dimension_numbers<[1], [0], [0], [1], [0, 0, 1, 1], [], []>} : vector<16x512xf32>, vector<512x128xf32>, vector<16x128xf32> -> vector<16x128xf32>
    %20 = arith.addf %17, %19 : vector<16x128xf32>
    %c0_14 = arith.constant 0 : index
    %c0_15 = arith.constant 0 : index
    %21 = vector.load %arg8[%c0_14, %c0_15] : memref<16x128xf32, #tpu.memory_space<vmem>>, vector<16x128xf32>
    tpu.vector_store %arg8[%c0_14, %c0_15], %20 {strides = array<i32>} : memref<16x128xf32, #tpu.memory_space<vmem>>, vector<16x128xf32>,
    %c0_i32_16 = arith.constant 0 : i32
    %22 = arith.cmpi eq, %arg1, %c0_i32_16 : i32
    %23 = arith.extui %22 : i1 to i32
    %c0_i32_17 = arith.constant 0 : i32
    %24 = arith.cmpi ne, %23, %c0_i32_17 : i32
    scf.if %24 {
      %c0_18 = arith.constant 0 : index
      %c0_19 = arith.constant 0 : index
      %25 = vector.load %arg8[%c0_18, %c0_19] : memref<16x128xf32, #tpu.memory_space<vmem>>, vector<16x128xf32>
      %c0_20 = arith.constant 0 : index
      %c0_21 = arith.constant 0 : index
      %26 = vector.load %arg7[%c0_20, %c0_21] : memref<16x128xf32, #tpu.memory_space<vmem>>, vector<16x128xf32>
      tpu.vector_store %arg7[%c0_20, %c0_21], %25 {strides = array<i32>} : memref<16x128xf32, #tpu.memory_space<vmem>>, vector<16x128xf32>,
    } else {
    }
    return
  }
  func.func @transform_0(%arg0: i32, %arg1: i32) -> (i32, i32) {
    %c0_i32 = arith.constant 0 : i32
    %c0_i32_0 = arith.constant 0 : i32
    return %arg0, %c0_i32 : i32, i32
  }
  func.func @transform_1(%arg0: i32, %arg1: i32) -> (i32, i32) {
    %c0_i32 = arith.constant 0 : i32
    %c0_i32_0 = arith.constant 0 : i32
    return %c0_i32, %arg1 : i32, i32
  }
  func.func @transform_2(%arg0: i32, %arg1: i32) -> (i32, i32) {
    %c0_i32 = arith.constant 0 : i32
    %c0_i32_0 = arith.constant 0 : i32
    return %c0_i32, %arg1 : i32, i32
  }
  func.func @transform_3(%arg0: i32, %arg1: i32) -> (i32, i32) {
    %c0_i32 = arith.constant 0 : i32
    %c0_i32_0 = arith.constant 0 : i32
    return %arg1, %c0_i32 : i32, i32
  }
  func.func @transform_4(%arg0: i32, %arg1: i32) -> (i32, i32) {
    %c0_i32 = arith.constant 0 : i32
    %c0_i32_0 = arith.constant 0 : i32
    %c0_i32_1 = arith.constant 0 : i32
    return %c0_i32, %c0_i32_0 : i32, i32
  }
  func.func @transform_5(%arg0: i32, %arg1: i32) -> (i32, i32) {
    %c0_i32 = arith.constant 0 : i32
    %c0_i32_0 = arith.constant 0 : i32
    return %arg0, %c0_i32 : i32, i32
  }
}

</mosaic_0001>

<bundles_post_ra>
// kernel: tpu_custom_call.1
= control target key start
LH: loop header
LB: loop body
LE: loop exit
PB: predicated region body
PF: predicated region fallthrough
CT: control target
= control target key end

     0   :  { %10 = vsyncpa [#allocation4], 0  ;;  %s1032_s0 = inlined_call_operand.hbm [shape: f32[16,128], index: 0, kind: input, shape index: {}]   ;;  %s1033_s1 = inlined_call_operand.hbm [shape: f32[128,512], index: 1, kind: input, shape index: {}]   ;;  %s1034_s2 = inlined_call_operand.vmem [shape: f32[1,512], index: 2, kind: input, shape index: {}]   ;;  %s1035_s3 = inlined_call_operand.hbm [shape: f32[512,128], index: 3, kind: input, shape index: {}]   ;;  %s1036_s4 = inlined_call_operand.vmem [shape: f32[1,128], index: 4, kind: input, shape index: {}]   ;;  %s1037_s5 = inlined_call_operand.hbm [shape: f32[16,128], index: 5, kind: output, shape index: {}]  }
   0x1   :  { %11 = vsyncpa [#allocation7], 0 }
   0x2   :  { %12 = vsyncpa [#allocation5], 0  ;;  %s926_s18 = smov [#allocation6]   ;;  %s832_s22 = scalar_lea.hbm %s1033_s1, 8192 }
   0x3   :  { %s30_s19 = sshll.u32 %s926_s18, 4  ;;  %p833_p0 = scmp.ne.s32.totalorder %s1033_s1, %s832_s22  ;;  %s31_s19 = int_to_ptr.vmem [resolvable:$true] %s30_s19 }
   0x4   :  { %p836_p1 = scmp.lt.u32.totalorder %s832_s22, %s1033_s1 }
   0x6   :  { %p838_p2 = pnand %p836_p1, %p833_p0 }
   0x8   :  { %841 = shalt.err (!%p838_p2)
}
   0x9   :  { %s842_s27 = scalar_lea.vmem %s31_s19, 8192  ;;  %p847_p4 = scmp.lt.s32.totalorder %s31_s19, %s31_s19 }
   0xa   :  { %p843_p3 = scmp.ne.s32.totalorder %s31_s19, %s842_s27  ;;  %p848_p5 = scmp.lt.s32.totalorder %s842_s27, %s842_s27 }
   0xc   :  { %p849_p6 = por %p848_p5, %p847_p4 }
   0xe   :  { %p850_p7 = pnand %p849_p6, %p843_p3 }
  0x10   :  { %853 = shalt.err (!%p850_p7)
}
  0x11   :  { %s927_s28 = smov 512   ;;  %s928_s29 = smov 32  }
  0x12   :  { %36 = dma.hbm_to_vmem [thread:$0]  %s1033_s1, 8192, %s31_s19, [#allocation7], %s927_s28, %s927_s28, %s928_s29  }
  0x13   :  { %s929_s7 = smov [#allocation3]   ;;  %s854_s11 = scalar_lea.hbm %s1032_s0, 256 }
  0x14   :  { %s18_s8 = sshll.u32 %s929_s7, 4  ;;  %p855_p8 = scmp.ne.s32.totalorder %s1032_s0, %s854_s11  ;;  %s19_s8 = int_to_ptr.vmem [resolvable:$true] %s18_s8 }
  0x15   :  { %p858_p9 = scmp.lt.u32.totalorder %s854_s11, %s1032_s0 }
  0x17   :  { %p860_p10 = pnand %p858_p9, %p855_p8 }
  0x19   :  { %863 = shalt.err (!%p860_p10)
}
  0x1a   :  { %s864_s16 = scalar_lea.vmem %s19_s8, 256  ;;  %p869_p12 = scmp.lt.s32.totalorder %s19_s8, %s19_s8 }
  0x1b   :  { %p865_p11 = scmp.ne.s32.totalorder %s19_s8, %s864_s16  ;;  %p870_p13 = scmp.lt.s32.totalorder %s864_s16, %s864_s16 }
  0x1d   :  { %p871_p0 = por %p870_p13, %p869_p12 }
  0x1f   :  { %p872_p1 = pnand %p871_p0, %p865_p11 }
  0x21   :  { %875 = shalt.err (!%p872_p1)
}
  0x22   :  { %s930_s1 = smov 128   ;;  %s931_s17 = smov 8  }
  0x23   :  { %24 = dma.hbm_to_vmem [thread:$0]  %s1032_s0, 256, %s19_s8, [#allocation4], %s930_s1, %s930_s1, %s931_s17  }
  0x24   :  { %s932_s20 = smov [#allocation8]   ;;  %s876_s24 = scalar_lea.hbm %s1035_s3, 8192 }
  0x25   :  { %s44_s21 = sshll.u32 %s932_s20, 4  ;;  %p877_p2 = scmp.ne.s32.totalorder %s1035_s3, %s876_s24  ;;  %s45_s21 = int_to_ptr.vmem [resolvable:$true] %s44_s21 }
  0x26   :  { %p880_p3 = scmp.lt.u32.totalorder %s876_s24, %s1035_s3 }
  0x28   :  { %p882_p4 = pnand %p880_p3, %p877_p2 }
  0x2a   :  { %885 = shalt.err (!%p882_p4)
}
  0x2b   :  { %s886_s29 = scalar_lea.vmem %s45_s21, 8192  ;;  %p891_p6 = scmp.lt.s32.totalorder %s45_s21, %s45_s21 }
  0x2c   :  { %p887_p5 = scmp.ne.s32.totalorder %s45_s21, %s886_s29  ;;  %p892_p7 = scmp.lt.s32.totalorder %s886_s29, %s886_s29 }
  0x2e   :  { %p893_p8 = por %p892_p7, %p891_p6 }
  0x30   :  { %p894_p9 = pnand %p893_p8, %p887_p5 }
  0x32   :  { %897 = shalt.err (!%p894_p9)
}
  0x33   :  { %50 = dma.hbm_to_vmem [thread:$0]  %s1035_s3, 8192, %s45_s21, [#allocation7], %s930_s1, %s930_s1, %s931_s17  }
  0x34   :  { %920 = dma.done.wait [#allocation4], 256  }
  0x35   :  { %921 = vsyncadd [#allocation4], 4294967040 }
  0x36   :  { %922 = dma.done.wait [#allocation7], 16384  }
  0x37   :  { %923 = vsyncadd [#allocation7], 4294950912  ;;  %v933_v0 = vmov 0.0   ;;  %v78_v1 = vld [vmem:[#allocation6 + $0x8] sm:$0xff]  ;;  %v80_v3 = vld [vmem:[#allocation6 + $0x18] sm:$0xff]  ;;  %s934_s8 = smov [#allocation9]  }
  0x38   :  { %227 = vmatprep.mubr.f32.mxu0 %v933_v0  ;;  %304 = vmatprep.mubr.f32.mxu1 %v933_v0  ;;  %v82_v2 = vld [vmem:[#allocation6 + $0x28] sm:$0xff]  ;;  %v84_v5 = vld [vmem:[#allocation6 + $0x38] sm:$0xff]  ;;  %v77_v6 = vld [vmem:[#allocation6] sm:$0xff]  ;;  %s589_s9 = sshll.u32 %s934_s8, 4  ;;  %s590_s9 = int_to_ptr.vmem [resolvable:$true] %s589_s9 }
  0x39   :  { %v679_v4 = vpack.c.bf16 %v82_v2, %v78_v1  ;;  %v81_v7 = vld [vmem:[#allocation6 + $0x20] sm:$0xff]  ;;  %v711_v8 = vpack.c.bf16 %v84_v5, %v80_v3  ;;  %v79_v10 = vld [vmem:[#allocation6 + $0x10] sm:$0xff]  ;;  %v86_v12 = vld [vmem:[#allocation6 + $0x48] sm:$0xff]  ;;  %s898_s10 = scalar_lea.vmem %s590_s9, 256  ;;  %p903_p11 = scmp.lt.s32.totalorder %s590_s9, %s590_s9 }
  0x3a   :  { %v681_v9 = vpack.c.bf16 %v81_v7, %v77_v6  ;;  %v83_v11 = vld [vmem:[#allocation6 + $0x30] sm:$0xff]  ;;  %v90_v14 = vld [vmem:[#allocation6 + $0x68] sm:$0xff]  ;;  %v88_v15 = vld [vmem:[#allocation6 + $0x58] sm:$0xff]  ;;  %p899_p10 = scmp.ne.s32.totalorder %s590_s9, %s898_s10  ;;  %p904_p12 = scmp.lt.s32.totalorder %s898_s10, %s898_s10 }
  0x3b   :  { %680 = vmatprep.subr.bf16.mxu0 %v679_v4  ;;  %v713_v13 = vpack.c.bf16 %v83_v11, %v79_v10  ;;  %v92_v16 = vld [vmem:[#allocation6 + $0x78] sm:$0xff]  ;;  %712 = vmatprep.subr.bf16.mxu1 %v711_v8  ;;  %v683_v17 = vpack.c.bf16 %v90_v14, %v86_v12  ;;  %v85_v19 = vld [vmem:[#allocation6 + $0x40] sm:$0xff]  ;;  %v87_v21 = vld [vmem:[#allocation6 + $0x50] sm:$0xff] }
  0x3c   :  { %682 = vmatpush1.bf16.msra.mxu0 %v681_v9  ;;  %v715_v18 = vpack.c.bf16 %v92_v16, %v88_v15  ;;  %v89_v20 = vld [vmem:[#allocation6 + $0x60] sm:$0xff]  ;;  %v91_v23 = vld [vmem:[#allocation6 + $0x70] sm:$0xff]  ;;  %v94_v24 = vld [vmem:[#allocation6 + $0x88] sm:$0xff]  ;;  %p905_p13 = por %p904_p12, %p903_p11 }
  0x3d   :  { %714 = vmatpush1.bf16.msra.mxu1 %v713_v13  ;;  %v685_v22 = vpack.c.bf16 %v89_v20, %v85_v19  ;;  %v98_v25 = vld [vmem:[#allocation6 + $0xa8] sm:$0xff]  ;;  %684 = vmatprep.subr.bf16.mxu0 %v683_v17  ;;  %v717_v26 = vpack.c.bf16 %v91_v23, %v87_v21  ;;  %v96_v28 = vld [vmem:[#allocation6 + $0x98] sm:$0xff]  ;;  %v93_v30 = vld [vmem:[#allocation6 + $0x80] sm:$0xff] }
  0x3e   :  { %716 = vmatprep.subr.bf16.mxu1 %v715_v18  ;;  %v687_v27 = vpack.c.bf16 %v98_v25, %v94_v24  ;;  %v100_v29 = vld [vmem:[#allocation6 + $0xb8] sm:$0xff]  ;;  %v97_v32 = vld [vmem:[#allocation6 + $0xa0] sm:$0xff]  ;;  %v95_v33 = vld [vmem:[#allocation6 + $0x90] sm:$0xff]  ;;  %p906_p0 = pnand %p905_p13, %p899_p10 }
  0x3f   :  { %v719_v31 = vpack.c.bf16 %v100_v29, %v96_v28  ;;  %v99_v34 = vld [vmem:[#allocation6 + $0xb0] sm:$0xff]  ;;  %v689_v35 = vpack.c.bf16 %v97_v32, %v93_v30  ;;  %v102_v36 = vld [vmem:[#allocation6 + $0xc8] sm:$0xff]  ;;  %v104_v38 = vld [vmem:[#allocation6 + $0xd8] sm:$0xff] }
  0x40   :  { %686 = vmatpush1.bf16.msra.mxu0 %v685_v22  ;;  %v106_v37 = vld [vmem:[#allocation6 + $0xe8] sm:$0xff]  ;;  %v721_v39 = vpack.c.bf16 %v99_v34, %v95_v33  ;;  %v108_v41 = vld [vmem:[#allocation6 + $0xf8] sm:$0xff]  ;;  %v101_v42 = vld [vmem:[#allocation6 + $0xc0] sm:$0xff] }
  0x41   :  { %718 = vmatpush1.bf16.msra.mxu1 %v717_v26  ;;  %688 = vmatprep.subr.bf16.mxu0 %v687_v27  ;;  %v691_v40 = vpack.c.bf16 %v106_v37, %v102_v36  ;;  %v105_v43 = vld [vmem:[#allocation6 + $0xe0] sm:$0xff]  ;;  %v723_v44 = vpack.c.bf16 %v108_v41, %v104_v38  ;;  %v103_v45 = vld [vmem:[#allocation6 + $0xd0] sm:$0xff]  ;;  %v110_v47 = vld [vmem:[#allocation6 + $0x108] sm:$0xff] }
  0x42   :  { %720 = vmatprep.subr.bf16.mxu1 %v719_v31  ;;  %v107_v46 = vld [vmem:[#allocation6 + $0xf0] sm:$0xff]  ;;  %v114_v48 = vld [vmem:[#allocation6 + $0x128] sm:$0xff]  ;;  %v112_v49 = vld [vmem:[#allocation6 + $0x118] sm:$0xff]  ;;  %v693_v51 = vpack.c.bf16 %v105_v43, %v101_v42 }
  0x43   :  { %v116_v50 = vld [vmem:[#allocation6 + $0x138] sm:$0xff]  ;;  %v725_v52 = vpack.c.bf16 %v107_v46, %v103_v45  ;;  %v695_v53 = vpack.c.bf16 %v114_v48, %v110_v47  ;;  %v109_v54 = vld [vmem:[#allocation6 + $0x100] sm:$0xff]  ;;  %v111_v56 = vld [vmem:[#allocation6 + $0x110] sm:$0xff] }
  0x44   :  { %690 = vmatpush1.bf16.msra.mxu0 %v689_v35  ;;  %v113_v55 = vld [vmem:[#allocation6 + $0x120] sm:$0xff]  ;;  %v727_v57 = vpack.c.bf16 %v116_v50, %v112_v49  ;;  %v115_v58 = vld [vmem:[#allocation6 + $0x130] sm:$0xff]  ;;  %v118_v59 = vld [vmem:[#allocation6 + $0x148] sm:$0xff] }
  0x45   :  { %722 = vmatpush1.bf16.msra.mxu1 %v721_v39  ;;  %692 = vmatprep.subr.bf16.mxu0 %v691_v40  ;;  %v122_v60 = vld [vmem:[#allocation6 + $0x168] sm:$0xff]  ;;  %v120_v61 = vld [vmem:[#allocation6 + $0x158] sm:$0xff]  ;;  %v697_v63 = vpack.c.bf16 %v113_v55, %v109_v54  ;;  %v729_v1 = vpack.c.bf16 %v115_v58, %v111_v56  ;;  %v117_v3 = vld [vmem:[#allocation6 + $0x140] sm:$0xff] }
  0x46   :  { %724 = vmatprep.subr.bf16.mxu1 %v723_v44  ;;  %v124_v62 = vld [vmem:[#allocation6 + $0x178] sm:$0xff]  ;;  %v699_v2 = vpack.c.bf16 %v122_v60, %v118_v59  ;;  %v121_v4 = vld [vmem:[#allocation6 + $0x160] sm:$0xff]  ;;  %v119_v5 = vld [vmem:[#allocation6 + $0x150] sm:$0xff] }
  0x47   :  { %v731_v6 = vpack.c.bf16 %v124_v62, %v120_v61  ;;  %v123_v7 = vld [vmem:[#allocation6 + $0x170] sm:$0xff]  ;;  %v126_v8 = vld [vmem:[#allocation6 + $0x188] sm:$0xff]  ;;  %v128_v10 = vld [vmem:[#allocation6 + $0x198] sm:$0xff]  ;;  %v701_v12 = vpack.c.bf16 %v121_v4, %v117_v3 }
  0x48   :  { %694 = vmatpush1.bf16.msra.mxu0 %v693_v51  ;;  %v130_v9 = vld [vmem:[#allocation6 + $0x1a8] sm:$0xff]  ;;  %v132_v11 = vld [vmem:[#allocation6 + $0x1b8] sm:$0xff]  ;;  %v733_v13 = vpack.c.bf16 %v123_v7, %v119_v5  ;;  %v125_v15 = vld [vmem:[#allocation6 + $0x180] sm:$0xff] }
  0x49   :  { %726 = vmatpush1.bf16.msra.mxu1 %v725_v52  ;;  %696 = vmatprep.subr.bf16.mxu0 %v695_v53  ;;  %v703_v14 = vpack.c.bf16 %v130_v9, %v126_v8  ;;  %v129_v16 = vld [vmem:[#allocation6 + $0x1a0] sm:$0xff]  ;;  %v127_v17 = vld [vmem:[#allocation6 + $0x190] sm:$0xff]  ;;  %v735_v18 = vpack.c.bf16 %v132_v11, %v128_v10  ;;  %v134_v20 = vld [vmem:[#allocation6 + $0x1c8] sm:$0xff] }
  0x4a   :  { %728 = vmatprep.subr.bf16.mxu1 %v727_v57  ;;  %v131_v19 = vld [vmem:[#allocation6 + $0x1b0] sm:$0xff]  ;;  %v138_v21 = vld [vmem:[#allocation6 + $0x1e8] sm:$0xff]  ;;  %v136_v22 = vld [vmem:[#allocation6 + $0x1d8] sm:$0xff]  ;;  %v705_v24 = vpack.c.bf16 %v129_v16, %v125_v15 }
  0x4b   :  { %v140_v23 = vld [vmem:[#allocation6 + $0x1f8] sm:$0xff]  ;;  %v737_v25 = vpack.c.bf16 %v131_v19, %v127_v17  ;;  %v707_v26 = vpack.c.bf16 %v138_v21, %v134_v20  ;;  %v133_v27 = vld [vmem:[#allocation6 + $0x1c0] sm:$0xff]  ;;  %v135_v29 = vld [vmem:[#allocation6 + $0x1d0] sm:$0xff] }
  0x4c   :  { %698 = vmatpush1.bf16.msra.mxu0 %v697_v63  ;;  %v137_v28 = vld [vmem:[#allocation6 + $0x1e0] sm:$0xff]  ;;  %v739_v30 = vpack.c.bf16 %v140_v23, %v136_v22  ;;  %v139_v31 = vld [vmem:[#allocation6 + $0x1f0] sm:$0xff]  ;;  %v376_v33 = vld [vmem:[#allocation8 + $0x88] sm:$0xff] }
  0x4d   :  { %730 = vmatpush1.bf16.msra.mxu1 %v729_v1  ;;  %700 = vmatprep.subr.bf16.mxu0 %v699_v2  ;;  %v375_v32 = vld [vmem:[#allocation8 + $0x80] sm:$0xff]  ;;  %v408_v35 = vld [vmem:[#allocation8 + $0x188] sm:$0xff]  ;;  %v709_v36 = vpack.c.bf16 %v137_v28, %v133_v27  ;;  %v741_v37 = vpack.c.bf16 %v139_v31, %v135_v29  ;;  %v377_v44 = vld [vmem:[#allocation8 + $0x90] sm:$0xff] }
  0x4e   :  { %732 = vmatprep.subr.bf16.mxu1 %v731_v6  ;;  %v407_v34 = vld [vmem:[#allocation8 + $0x180] sm:$0xff]  ;;  %v743_v38 = vpack.c.bf16 %v376_v33, %v375_v32  ;;  %v360_v41 = vld [vmem:[#allocation8 + $0x8] sm:$0xff]  ;;  %v378_v45 = vld [vmem:[#allocation8 + $0x98] sm:$0xff] }
  0x4f   :  { %v775_v39 = vpack.c.bf16 %v408_v35, %v407_v34  ;;  %v359_v40 = vld [vmem:[#allocation8] sm:$0xff]  ;;  %v392_v43 = vld [vmem:[#allocation8 + $0x108] sm:$0xff]  ;;  %v75_v46 = vld [vmem:[#allocation3] sm:$0xff]  ;;  %v747_v51 = vpack.c.bf16 %v378_v45, %v377_v44 }
  0x50   :  { %702 = vmatpush1.bf16.msra.mxu0 %v701_v12  ;;  %v391_v42 = vld [vmem:[#allocation8 + $0x100] sm:$0xff]  ;;  %v409_v47 = vld [vmem:[#allocation8 + $0x190] sm:$0xff]  ;;  %v410_v48 = vld [vmem:[#allocation8 + $0x198] sm:$0xff]  ;;  %v745_v49 = vpack.c.bf16 %v360_v41, %v359_v40 }
  0x51   :  { %734 = vmatpush1.bf16.msra.mxu1 %v733_v13  ;;  %704 = vmatprep.subr.bf16.mxu0 %v703_v14  ;;  %v777_v50 = vpack.c.bf16 %v392_v43, %v391_v42  ;;  %v361_v52 = vld [vmem:[#allocation8 + $0x10] sm:$0xff]  ;;  %v362_v53 = vld [vmem:[#allocation8 + $0x18] sm:$0xff]  ;;  %v779_v55 = vpack.c.bf16 %v410_v48, %v409_v47  ;;  %v379_v57 = vld [vmem:[#allocation8 + $0xa0] sm:$0xff] }
  0x52   :  { %736 = vmatprep.subr.bf16.mxu1 %v735_v18  ;;  %v393_v54 = vld [vmem:[#allocation8 + $0x110] sm:$0xff]  ;;  %v394_v56 = vld [vmem:[#allocation8 + $0x118] sm:$0xff]  ;;  %v380_v58 = vld [vmem:[#allocation8 + $0xa8] sm:$0xff]  ;;  %v749_v62 = vpack.c.bf16 %v362_v53, %v361_v52 }
  0x53   :  { %v76_v59 = vld [vmem:[#allocation3 + $0x8] sm:$0xff]  ;;  %v411_v60 = vld [vmem:[#allocation8 + $0x1a0] sm:$0xff]  ;;  %v412_v61 = vld [vmem:[#allocation8 + $0x1a8] sm:$0xff]  ;;  %v781_v63 = vpack.c.bf16 %v394_v56, %v393_v54  ;;  %v751_v1 = vpack.c.bf16 %v380_v58, %v379_v57 }
  0x54   :  { %706 = vmatpush1.bf16.msra.mxu0 %v705_v24  ;;  %v363_v2 = vld [vmem:[#allocation8 + $0x20] sm:$0xff]  ;;  %v364_v3 = vld [vmem:[#allocation8 + $0x28] sm:$0xff]  ;;  %v783_v4 = vpack.c.bf16 %v412_v61, %v411_v60  ;;  %v382_v9 = vld [vmem:[#allocation8 + $0xb8] sm:$0xff] }
  0x55   :  { %738 = vmatpush1.bf16.msra.mxu1 %v737_v25  ;;  %708 = vmatprep.subr.bf16.mxu0 %v707_v26  ;;  %v395_v5 = vld [vmem:[#allocation8 + $0x120] sm:$0xff]  ;;  %v396_v6 = vld [vmem:[#allocation8 + $0x128] sm:$0xff]  ;;  %v753_v7 = vpack.c.bf16 %v364_v3, %v363_v2  ;;  %v413_v10 = vld [vmem:[#allocation8 + $0x1b0] sm:$0xff] }
  0x56   :  { %740 = vmatprep.subr.bf16.mxu1 %v739_v30  ;;  %v785_v8 = vpack.c.bf16 %v396_v6, %v395_v5  ;;  %v414_v12 = vld [vmem:[#allocation8 + $0x1b8] sm:$0xff]  ;;  %v365_v13 = vld [vmem:[#allocation8 + $0x30] sm:$0xff]  ;;  %v383_v20 = vld [vmem:[#allocation8 + $0xc0] sm:$0xff]  ;;  %v143_v5 = vlaneseq }
  0x57   :  { %v366_v14 = vld [vmem:[#allocation8 + $0x38] sm:$0xff]  ;;  %v787_v15 = vpack.c.bf16 %v414_v12, %v413_v10  ;;  %v397_v17 = vld [vmem:[#allocation8 + $0x130] sm:$0xff]  ;;  %v384_v21 = vld [vmem:[#allocation8 + $0xc8] sm:$0xff] }
  0x58   :  { %710 = vmatpush1.bf16.msra.mxu0 %v709_v36  ;;  %v757_v16 = vpack.c.bf16 %v366_v14, %v365_v13  ;;  %v398_v18 = vld [vmem:[#allocation8 + $0x138] sm:$0xff]  ;;  %v415_v22 = vld [vmem:[#allocation8 + $0x1c0] sm:$0xff]  ;;  %v759_v23 = vpack.c.bf16 %v384_v21, %v383_v20  ;;  %v416_v24 = vld [vmem:[#allocation8 + $0x1c8] sm:$0xff]  ;;  %v144_v6 = vshrl.u32 %v143_v5, 7 }
  0x59   :  { %742 = vmatpush1.bf16.msra.mxu1 %v741_v37  ;;  %744 = vmatprep.subr.bf16.mxu0 %v743_v38  ;;  %v789_v19 = vpack.c.bf16 %v398_v18, %v397_v17  ;;  %v367_v25 = vld [vmem:[#allocation8 + $0x40] sm:$0xff]  ;;  %v368_v26 = vld [vmem:[#allocation8 + $0x48] sm:$0xff]  ;;  %v791_v27 = vpack.c.bf16 %v416_v24, %v415_v22  ;;  %v385_v32 = vld [vmem:[#allocation8 + $0xd0] sm:$0xff] }
  0x5a   :  { %776 = vmatprep.subr.bf16.mxu1 %v775_v39  ;;  %v761_v28 = vpack.c.bf16 %v368_v26, %v367_v25  ;;  %v399_v29 = vld [vmem:[#allocation8 + $0x140] sm:$0xff]  ;;  %v400_v30 = vld [vmem:[#allocation8 + $0x148] sm:$0xff]  ;;  %v386_v33 = vld [vmem:[#allocation8 + $0xd8] sm:$0xff]  ;;  %v157_v10 = vsub.s32 3, %v144_v6 }
  0x5b   :  { %228 = vmatmul.mubr.f32.vlgmr.msra.gmra.mrb[0].mxu0 %v75_v46  ;;  %v793_v31 = vpack.c.bf16 %v400_v30, %v399_v29  ;;  %v417_v34 = vld [vmem:[#allocation8 + $0x1d0] sm:$0xff]  ;;  %v763_v35 = vpack.c.bf16 %v386_v33, %v385_v32  ;;  %v418_v36 = vld [vmem:[#allocation8 + $0x1d8] sm:$0xff]  ;;  %v387_v44 = vld [vmem:[#allocation8 + $0xe0] sm:$0xff] }
  0x5c   :  { %305 = vmatmul.mubr.f32.vlgmr.msra.gmra.mrb[0].mxu1 %v75_v46  ;;  %233 = vmatprep.mubr.f32.mxu0 %v933_v0  ;;  %v369_v37 = vld [vmem:[#allocation8 + $0x50] sm:$0xff]  ;;  %v370_v38 = vld [vmem:[#allocation8 + $0x58] sm:$0xff]  ;;  %v795_v39 = vpack.c.bf16 %v418_v36, %v417_v34  ;;  %v388_v45 = vld [vmem:[#allocation8 + $0xe8] sm:$0xff] }
  0x5d   :  { %310 = vmatprep.mubr.f32.mxu1 %v933_v0  ;;  %746 = vmatpush3.bf16.msra.mxu0 %v745_v49  ;;  %v381_v0 = vld [vmem:[#allocation8 + $0xb0] sm:$0xff]  ;;  %v765_v40 = vpack.c.bf16 %v370_v38, %v369_v37  ;;  %v402_v42 = vld [vmem:[#allocation8 + $0x158] sm:$0xff]  ;;  %v419_v46 = vld [vmem:[#allocation8 + $0x1e0] sm:$0xff]  ;;  %v767_v47 = vpack.c.bf16 %v388_v45, %v387_v44 }
  0x5e   :  { %778 = vmatpush3.bf16.msra.mxu1 %v777_v50  ;;  %748 = vmatprep.subr.bf16.mxu0 %v747_v51  ;;  %v755_v11 = vpack.c.bf16 %v382_v9, %v381_v0  ;;  %v401_v41 = vld [vmem:[#allocation8 + $0x150] sm:$0xff]  ;;  %v420_v48 = vld [vmem:[#allocation8 + $0x1e8] sm:$0xff]  ;;  %v371_v49 = vld [vmem:[#allocation8 + $0x60] sm:$0xff]  ;;  %v153_v0 = vsub.s32 2, %v144_v6  ;;  %v149_v9 = vsub.s32 1, %v144_v6 }
  0x5f   :  { %234 = vmatmul.mubr.f32.gmra.mrb[2].mxu0 %v76_v59  ;;  %780 = vmatprep.subr.bf16.mxu1 %v779_v55  ;;  %v797_v43 = vpack.c.bf16 %v402_v42, %v401_v41  ;;  %v372_v50 = vld [vmem:[#allocation8 + $0x68] sm:$0xff]  ;;  %v799_v51 = vpack.c.bf16 %v420_v48, %v419_v46  ;;  %v403_v53 = vld [vmem:[#allocation8 + $0x160] sm:$0xff]  ;;  %v389_v56 = vld [vmem:[#allocation8 + $0xf0] sm:$0xff] }
  0x60   :  { %311 = vmatmul.mubr.f32.gmra.mrb[2].mxu1 %v76_v59  ;;  %v769_v52 = vpack.c.bf16 %v372_v50, %v371_v49  ;;  %v404_v54 = vld [vmem:[#allocation8 + $0x168] sm:$0xff]  ;;  %v390_v57 = vld [vmem:[#allocation8 + $0xf8] sm:$0xff]  ;;  %v421_v58 = vld [vmem:[#allocation8 + $0x1f0] sm:$0xff] }
  0x61   :  { %750 = vmatpush3.bf16.msra.mxu0 %v749_v62  ;;  %v801_v55 = vpack.c.bf16 %v404_v54, %v403_v53  ;;  %v771_v59 = vpack.c.bf16 %v390_v57, %v389_v56  ;;  %v422_v60 = vld [vmem:[#allocation8 + $0x1f8] sm:$0xff]  ;;  %v373_v61 = vld [vmem:[#allocation8 + $0x70] sm:$0xff] }
  0x62   :  { %782 = vmatpush3.bf16.msra.mxu1 %v781_v63  ;;  %752 = vmatprep.subr.bf16.mxu0 %v751_v1  ;;  %v374_v62 = vld [vmem:[#allocation8 + $0x78] sm:$0xff]  ;;  %v803_v63 = vpack.c.bf16 %v422_v60, %v421_v58  ;;  %v405_v2 = vld [vmem:[#allocation8 + $0x170] sm:$0xff] }
  0x63   :  { %784 = vmatprep.subr.bf16.mxu1 %v783_v4  ;;  %v773_v1 = vpack.c.bf16 %v374_v62, %v373_v61  ;;  %v406_v3 = vld [vmem:[#allocation8 + $0x178] sm:$0xff] }
  0x64   :  { %v805_v4 = vpack.c.bf16 %v406_v3, %v405_v2 }
  0x65   :  { %754 = vmatpush3.bf16.msra.mxu0 %v753_v7  ;;  %v145_v7 = vsub.s32 0, %v144_v6 }
  0x66   :  { %786 = vmatpush3.bf16.msra.mxu1 %v785_v8  ;;  %756 = vmatprep.subr.bf16.mxu0 %v755_v11  ;;  %v141_v8 = vld [vmem:[%s1034_s2] sm:$0xf] }
  0x67   :  { %788 = vmatprep.subr.bf16.mxu1 %v787_v15  ;;  %v146_v11 = vrot.slane %v141_v8, %v145_v7  ;;  %v154_v12 = vrot.slane %v141_v8, %v153_v0  ;;  %v150_v13 = vrot.slane %v141_v8, %v149_v9  ;;  %v158_v14 = vrot.slane %v141_v8, %v157_v10 }
  0x69   :  { %758 = vmatpush3.bf16.msra.mxu0 %v757_v16 }
  0x6a   :  { %790 = vmatpush3.bf16.msra.mxu1 %v789_v19  ;;  %760 = vmatprep.subr.bf16.mxu0 %v759_v23 }
  0x6b   :  { %792 = vmatprep.subr.bf16.mxu1 %v791_v27 }
  0x6d   :  { %762 = vmatpush3.bf16.msra.mxu0 %v761_v28 }
  0x6e   :  { %794 = vmatpush3.bf16.msra.mxu1 %v793_v31  ;;  %764 = vmatprep.subr.bf16.mxu0 %v763_v35 }
  0x6f   :  { %796 = vmatprep.subr.bf16.mxu1 %v795_v39 }
  0x71   :  { %766 = vmatpush3.bf16.msra.mxu0 %v765_v40 }
  0x72   :  { %798 = vmatpush3.bf16.msra.mxu1 %v797_v43  ;;  %768 = vmatprep.subr.bf16.mxu0 %v767_v47 }
  0x73   :  { %800 = vmatprep.subr.bf16.mxu1 %v799_v51 }
  0x75   :  { %770 = vmatpush3.bf16.msra.mxu0 %v769_v52 }
  0x76   :  { %802 = vmatpush3.bf16.msra.mxu1 %v801_v55  ;;  %772 = vmatprep.subr.bf16.mxu0 %v771_v59 }
  0x77   :  { %804 = vmatprep.subr.bf16.mxu1 %v803_v63 }
  0x79   :  { %774 = vmatpush3.bf16.msra.mxu0 %v773_v1 }
  0x7a   :  { %806 = vmatpush3.bf16.msra.mxu1 %v805_v4 }
 0x12e   :  { %v229_v15 = vpop.f32.mrb[0].mxu0 }
 0x12f   :  { %v230_v16 = vadd.f32 %v229_v15, %v146_v11  ;;  %v306_v17 = vpop.f32.mrb[0].mxu1  ;;  %v231_v18 = vpop.f32.mrb[1].mxu0 }
 0x130   :  { %v307_v19 = vadd.f32 %v306_v17, %v154_v12  ;;  %v232_v20 = vadd.f32 %v231_v18, %v150_v13  ;;  %v308_v21 = vpop.f32.mrb[1].mxu1 }
 0x131   :  { %v325_v22 = vmul.f32 0.70710677, %v230_v16  ;;  %v309_v23 = vadd.f32 %v308_v21, %v158_v14  ;;  %v317_v47 = vmul.f32 0.5, %v230_v16 }
 0x132   :  { %v327_v24 = vmul.f32 0.70710677, %v307_v19  ;;  %v326_v25 = vmul.f32 0.70710677, %v232_v20  ;;  %v235_v27 = vpop.f32.mrb[2].mxu0  ;;  %v318_v45 = vmul.f32 0.5, %v232_v20 }
 0x133   :  { %816 = verf.f32 %v325_v22  ;;  %v328_v26 = vmul.f32 0.70710677, %v309_v23  ;;  %v312_v28 = vpop.f32.mrb[2].mxu1  ;;  %v236_v29 = vadd.f32 %v235_v27, %v146_v11  ;;  %v237_v31 = vpop.f32.mrb[3].mxu0  ;;  %v320_v48 = vmul.f32 0.5, %v309_v23 }
 0x134   :  { %818 = verf.f32 %v327_v24  ;;  %v313_v30 = vadd.f32 %v312_v28, %v154_v12  ;;  %v314_v32 = vpop.f32.mrb[3].mxu1  ;;  %v238_v33 = vadd.f32 %v237_v31, %v150_v13  ;;  %v319_v51 = vmul.f32 0.5, %v307_v19  ;;  %v602_v13 = vld [vmem:[%s1036_s4] ss:$0 sm:$0xff] }
 0x135   :  { %820 = verf.f32 %v326_v25  ;;  %v315_v34 = vadd.f32 %v314_v32, %v158_v14  ;;  %v329_v35 = vmul.f32 0.70710677, %v236_v29  ;;  %v321_v63 = vmul.f32 0.5, %v236_v29 }
 0x136   :  { %822 = verf.f32 %v328_v26  ;;  %v331_v36 = vmul.f32 0.70710677, %v313_v30  ;;  %v330_v37 = vmul.f32 0.70710677, %v238_v33  ;;  %v322_v61 = vmul.f32 0.5, %v238_v33 }
 0x137   :  { %824 = verf.f32 %v329_v35  ;;  %v332_v38 = vmul.f32 0.70710677, %v315_v34  ;;  %v324_v1 = vmul.f32 0.5, %v315_v34  ;;  %v323_v3 = vmul.f32 0.5, %v313_v30 }
 0x138   :  { %826 = verf.f32 %v331_v36 }
 0x139   :  { %828 = verf.f32 %v330_v37 }
 0x13a   :  { %830 = verf.f32 %v332_v38 }
 0x13d   :  { %v817_v39 = vpop.eup %816 }
 0x13e   :  { %v819_v40 = vpop.eup %818  ;;  %v341_v42 = vadd.f32 1.0, %v817_v39 }
 0x13f   :  { %v821_v41 = vpop.eup %820  ;;  %v343_v44 = vadd.f32 1.0, %v819_v40 }
 0x140   :  { %v823_v43 = vpop.eup %822  ;;  %v342_v46 = vadd.f32 1.0, %v821_v41  ;;  %v349_v54 = vmul.f32 %v341_v42, %v317_v47 }
 0x141   :  { %v344_v49 = vadd.f32 1.0, %v823_v43  ;;  %v825_v50 = vpop.eup %824  ;;  %v351_v57 = vmul.f32 %v343_v44, %v319_v51 }
 0x142   :  { %v350_v52 = vmul.f32 %v342_v46, %v318_v45  ;;  %v827_v53 = vpop.eup %826  ;;  %v345_v58 = vadd.f32 1.0, %v825_v50 }
 0x143   :  { %v352_v55 = vmul.f32 %v344_v49, %v320_v48  ;;  %v829_v56 = vpop.eup %828  ;;  %v347_v60 = vadd.f32 1.0, %v827_v53 }
 0x144   :  { %487 = vmatprep.mubr.f32.mxu0 %v350_v52  ;;  %v831_v59 = vpop.eup %830  ;;  %v346_v62 = vadd.f32 1.0, %v829_v56  ;;  %v353_v6 = vmul.f32 %v345_v58, %v321_v63 }
 0x145   :  { %562 = vmatprep.mubr.f32.mxu1 %v352_v55  ;;  %488 = vmatmul.mubr.f32.vlgmr.msra.gmra.mrb[4].mxu0 %v349_v54  ;;  %v348_v2 = vadd.f32 1.0, %v831_v59  ;;  %v355_v7 = vmul.f32 %v347_v60, %v323_v3 }
 0x146   :  { %563 = vmatmul.mubr.f32.vlgmr.msra.gmra.mrb[4].mxu1 %v351_v57  ;;  %v354_v4 = vmul.f32 %v346_v62, %v322_v61 }
 0x147   :  { %v356_v5 = vmul.f32 %v348_v2, %v324_v1 }
 0x148   :  { %492 = vmatprep.mubr.f32.mxu0 %v354_v4 }
 0x149   :  { %567 = vmatprep.mubr.f32.mxu1 %v356_v5  ;;  %493 = vmatmul.mubr.f32.gmra.mrb[6].mxu0 %v353_v6 }
 0x14a   :  { %568 = vmatmul.mubr.f32.gmra.mrb[6].mxu1 %v355_v7 }
 0x218   :  { %v635_v8 = vpop.f32.mrb[4].mxu0 }
 0x219   :  { %v673_v0 = vpop.f32.mrb[4].mxu1  ;;  %v636_v9 = vpop.f32.mrb[5].mxu0 }
 0x21a   :  { %v637_v10 = vadd.f32 %v636_v9, %v635_v8  ;;  %v674_v11 = vpop.f32.mrb[5].mxu1 }
 0x21b   :  { %v675_v12 = vadd.f32 %v674_v11, %v673_v0 }
 0x21c   :  { %v638_v15 = vpop.f32.mrb[6].mxu0 }
 0x21d   :  { %v565_v14 = vadd.f32 %v675_v12, %v637_v10  ;;  %v676_v16 = vpop.f32.mrb[6].mxu1  ;;  %v639_v17 = vpop.f32.mrb[7].mxu0 }
 0x21e   :  { %v640_v19 = vadd.f32 %v639_v17, %v638_v15  ;;  %v677_v20 = vpop.f32.mrb[7].mxu1 }
 0x21f   :  { %v573_v18 = vadd.f32 %v602_v13, %v565_v14  ;;  %v678_v21 = vadd.f32 %v677_v20, %v676_v16 }
 0x221   :  { %582 = vst [vmem:[#allocation9] sm:$0xff] %v573_v18  ;;  %v570_v22 = vadd.f32 %v678_v21, %v640_v19 }
 0x223   :  { %v574_v23 = vadd.f32 %v602_v13, %v570_v22 }
 0x225   :  { %583 = vst [vmem:[#allocation9 + $0x8] sm:$0xff] %v574_v23 }
 0x226   :  { %909 = shalt.err (!%p906_p0)
}
 0x227   :  { %s910_s12 = scalar_lea.hbm %s1037_s5, 256 }
 0x228   :  { %p911_p1 = scmp.ne.s32.totalorder %s1037_s5, %s910_s12  ;;  %p914_p2 = scmp.lt.u32.totalorder %s910_s12, %s1037_s5 }
 0x22a   :  { %p916_p3 = pnand %p914_p2, %p911_p1 }
 0x22c   :  { %919 = shalt.err (!%p916_p3)
}
 0x22d   :  { %595 = dma.vmem_to_hbm [thread:$0]  %s590_s9, 256, %s1037_s5, [#allocation5], %s930_s1, %s930_s1, %s931_s17  }
 0x22e   :  { %924 = dma.done.wait [#allocation5], 256  }
 0x22f   :  { %925 = vsyncadd [#allocation5], 4294967040 }
 0x230   :  { %599 = vsyncpa [#allocation4], 1 }
 0x231   :  { %600 = vsyncpa [#allocation7], 1 }
 0x232   :  { %601 = vsyncpa [#allocation5], 1 }

</bundles_post_ra>
